<compile_context>
chip_gen: v7x
topology: tpu7x:2x2x1
jax: 0.10.0
libtpu: 0.0.40
codegen_flags: <defaults>
</compile_context>

<pallas_src>
import jax
import jax.numpy as jnp
from jax.experimental import pallas as pl
from jax.experimental.pallas import tpu as pltpu


def _round_up(x, m):
    return (x + m - 1) // m * m


def _segment_mlp_kernel(seg_ref, feat_ref, wpack_ref, vpack_ref, out_ref, acc_ref):
    """Row-tiled, graph-batched SegmentSumMLP forward.

    Grid = (B, n_row_tiles); batch axis "parallel", row axis "arbitrary".

    seg_ref   : (1, tm)   int32  per-row segment id for this row tile (-1 = pad row)
    feat_ref  : (tm, D)   f32/bf16 feature rows for this tile
    wpack_ref : (D+3H, H) bf16   [w1; w2; w3; w4] stacked along rows (resident)
    vpack_ref : (8, H)    f32    rows: b1, b2, b3, b4, decoder_w, decoder_b, 0, 0
    out_ref   : (1, S)    f32    lane-dense per-segment scores (S = padded n_seg)
    acc_ref   : (S, H)    f32    running segment sums (VMEM scratch, per graph)
    """
    d_in = feat_ref.shape[1]
    h = vpack_ref.shape[1]
    s_pad = out_ref.shape[1]
    tm = feat_ref.shape[0]

    i = pl.program_id(1)  # row-tile index within the current graph

    @pl.when(i == 0)
    def _init():
        acc_ref[...] = jnp.zeros_like(acc_ref)

    # ---- encoder: Linear -> ReLU -> Linear -> ReLU (bf16 MXU, f32 accum) ----
    x = feat_ref[...].astype(jnp.bfloat16)                     # (tm, D)
    w1 = wpack_ref[0:d_in, :]                                  # static ref slices: free
    w2 = wpack_ref[d_in:d_in + h, :]
    b1 = vpack_ref[0:1, :]
    b2 = vpack_ref[1:2, :]
    e = jnp.dot(x, w1, preferred_element_type=jnp.float32) + b1
    e = jnp.maximum(e, 0.0)
    e = jnp.dot(e.astype(jnp.bfloat16), w2, preferred_element_type=jnp.float32) + b2
    e = jnp.maximum(e, 0.0)                                    # (tm, H) f32

    # ---- scatter_add for this tile: one-hot (S, tm) matmul (exact in bf16) --
    seg_ids = seg_ref[...]                                     # (1, tm) int32
    seg_iota = jax.lax.broadcasted_iota(jnp.int32, (s_pad, tm), 0)
    onehot = jnp.where(seg_iota == seg_ids, 1.0, 0.0).astype(jnp.bfloat16)
    acc_ref[...] += jnp.dot(onehot, e.astype(jnp.bfloat16),
                            preferred_element_type=jnp.float32)

    # ---- epilogue on the final row tile of each graph ------------------------
    @pl.when(i == pl.num_programs(1) - 1)
    def _epilogue():
        w3 = wpack_ref[d_in + h:d_in + 2 * h, :]
        w4 = wpack_ref[d_in + 2 * h:d_in + 3 * h, :]
        b3 = vpack_ref[2:3, :]
        b4 = vpack_ref[3:4, :]
        wd = vpack_ref[4:5, :]                                 # (1, H) decoder weight
        bd = vpack_ref[5:6, 0:1]                               # (1, 1) decoder bias

        seg_sum = acc_ref[...]                                 # (S, H) f32
        # norm = Identity (use_norm=False)
        o = jnp.dot(seg_sum.astype(jnp.bfloat16), w3,
                    preferred_element_type=jnp.float32) + b3
        o = jnp.maximum(o, 0.0) + seg_sum                      # layer0 residual
        o2 = jnp.dot(o.astype(jnp.bfloat16), w4,
                     preferred_element_type=jnp.float32) + b4
        o2 = jnp.maximum(o2, 0.0) + o                          # layer1 residual
        # decoder: contract the LAST dims of wd (1,H) and o2 (S,H) -> (1, S).
        # This lands segments on lanes (lane-dense store) without ever
        # materializing o2.T (no XLU relayout of the (S,H) tile).
        scores = jax.lax.dot_general(
            wd.astype(jnp.bfloat16), o2.astype(jnp.bfloat16),
            dimension_numbers=(((1,), (1,)), ((), ())),
            preferred_element_type=jnp.float32)
        out_ref[...] = scores + bd
        # sigmoid = Identity (use_sigmoid=False)


def _build_seg_ids(segment_sizes, n_pad):
    """(B, n_seg) sizes -> (B, n_pad) int32 segment ids; padded rows get -1.

    Cumsum/compare formulation: jit- and vmap-safe, no host sync, no dynamic
    repeat lengths.
    """
    sizes = segment_sizes.astype(jnp.int32)
    csum = jnp.cumsum(sizes, axis=-1)                          # (B, S)
    total = csum[..., -1:]                                     # (B, 1)
    r = jnp.arange(n_pad, dtype=jnp.int32)                     # (P,)
    # segment id of row r = number of segments whose cumulative end <= r
    seg = jnp.sum((r[None, :, None] >= csum[:, None, :]).astype(jnp.int32),
                  axis=-1)                                     # (B, P)
    return jnp.where(r[None, :] < total, seg, -1).astype(jnp.int32)


def _pack_params(params):
    (w1, b1), (w2, b2), (w3, b3), (w4, b4), (wd, bd) = params
    h_dim = w1.shape[1]
    wpack = jnp.concatenate([w1, w2, w3, w4], axis=0).astype(jnp.bfloat16)
    # row 5: decoder bias scalar broadcast across the row; kernel only reads col 0.
    vpack = (jnp.zeros((8, h_dim), jnp.float32)
             .at[0].set(b1).at[1].set(b2).at[2].set(b3).at[3].set(b4)
             .at[4].set(wd.reshape(h_dim)).at[5].set(bd.reshape(())))
    return wpack, vpack, h_dim


def segment_sum_mlp_batched(segment_sizes, features, params, *, tm_max=512):
    """Batched SegmentSumMLP forward (B graphs in one pallas_call).

    segment_sizes : (B, n_seg) int — per-graph segment sizes
    features      : (B, n_rows, D) f32/bf16 — per-graph feature rows; rows
                    beyond sum(segment_sizes[b]) are ignored (segment id -1).
    Returns (B, n_seg) f32 scores.  Fully jit-compatible (no host syncs).
    """
    b_dim, n_seg = segment_sizes.shape
    _, n_rows, d_in = features.shape

    # Big row tiles: a single tile for small graphs, 512-row tiles at scale.
    tm = min(tm_max, _round_up(n_rows, 8))
    n_pad = _round_up(n_rows, tm)
    s_pad = max(8, _round_up(n_seg, 8))

    if n_pad != n_rows:
        feat_p = jnp.pad(features, ((0, 0), (0, n_pad - n_rows), (0, 0)))
    else:
        feat_p = features
    seg_ids = _build_seg_ids(segment_sizes, n_pad).reshape(b_dim, 1, n_pad)

    wpack, vpack, h_dim = _pack_params(params)

    grid = (b_dim, n_pad // tm)
    out = pl.pallas_call(
        _segment_mlp_kernel,
        out_shape=jax.ShapeDtypeStruct((b_dim, 1, s_pad), jnp.float32),
        grid_spec=pltpu.PrefetchScalarGridSpec(
            num_scalar_prefetch=0,
            grid=grid,
            in_specs=[
                pl.BlockSpec((None, 1, tm), lambda b, i: (b, 0, i)),      # seg ids
                pl.BlockSpec((None, tm, d_in), lambda b, i: (b, i, 0)),   # features
                pl.BlockSpec(wpack.shape, lambda b, i: (0, 0)),           # weights (resident)
                pl.BlockSpec(vpack.shape, lambda b, i: (0, 0)),           # biases  (resident)
            ],
            out_specs=pl.BlockSpec((None, 1, s_pad), lambda b, i: (b, 0, 0)),
            scratch_shapes=[pltpu.VMEM((s_pad, h_dim), jnp.float32)],
        ),
        compiler_params=pltpu.CompilerParams(
            # Batch axis is independent -> "parallel" (v7x megacore gets work).
            # Row axis carries the segment-sum accumulator + epilogue -> "arbitrary".
            dimension_semantics=("parallel", "arbitrary"),
            # Per-step residency is a couple of MiB; leave plenty of headroom
            # on every generation (v7x: 64 MiB physical).
            vmem_limit_bytes=32 * 1024 * 1024,
        ),
    )(seg_ids, feat_p, wpack, vpack)

    return out[:, 0, :n_seg]


def segment_sum_mlp(segment_sizes, features, params, *, tm_max=512):
    """Single-graph forward matching SegmentSumMLP.forward (B=1 wrapper)."""
    out = segment_sum_mlp_batched(segment_sizes[None, :], features[None, ...],
                                  params, tm_max=tm_max)
    return out[0]   # decoder(...).squeeze()


def _reference(segment_sizes, features, params, *, mxu_bf16):
    """Pure-JAX forward. mxu_bf16=True mimics the kernel's bf16 MXU operands."""
    (w1, b1), (w2, b2), (w3, b3), (w4, b4), (wd, bd) = params
    n_seg = int(segment_sizes.shape[0])

    def mm(a, w):
        if mxu_bf16:
            return jnp.dot(a.astype(jnp.bfloat16), w.astype(jnp.bfloat16),
                           preferred_element_type=jnp.float32)
        return jnp.dot(a, w, precision=jax.lax.Precision.HIGHEST,
                       preferred_element_type=jnp.float32)

    h = jnp.maximum(mm(features, w1) + b1, 0.0)
    h = jnp.maximum(mm(h, w2) + b2, 0.0)
    if mxu_bf16:  # kernel feeds bf16-rounded encodings into the segment-sum matmul
        h = h.astype(jnp.bfloat16).astype(jnp.float32)
    seg_ids = jnp.repeat(jnp.arange(n_seg), segment_sizes.astype(jnp.int32),
                         total_repeat_length=features.shape[0])
    seg_sum = jax.ops.segment_sum(h, seg_ids, num_segments=n_seg)
    o = jnp.maximum(mm(seg_sum, w3) + b3, 0.0) + seg_sum
    o = jnp.maximum(mm(o, w4) + b4, 0.0) + o
    return (mm(o, wd) + bd).reshape(n_seg)


def _init_params(key, input_dim, hidden_dim, output_dim):
    """Deterministic small-scale parameter init (weights stored (in, out))."""
    ks = jax.random.split(key, 10)

    def lin(kw, kb, din, dout):
        lim = 1.0 / jnp.sqrt(din)
        w = jax.random.uniform(kw, (din, dout), jnp.float32, -lim, lim)
        b = jax.random.uniform(kb, (dout,), jnp.float32, -lim, lim)
        return w, b

    return (
        lin(ks[0], ks[1], input_dim, hidden_dim),    # encoder[0]
        lin(ks[2], ks[3], hidden_dim, hidden_dim),   # encoder[2]
        lin(ks[4], ks[5], hidden_dim, hidden_dim),   # layer0
        lin(ks[6], ks[7], hidden_dim, hidden_dim),   # layer1
        lin(ks[8], ks[9], hidden_dim, output_dim),   # decoder
    )


if __name__ == "__main__":
    INPUT_DIM = 64
    HIDDEN_DIM = 128
    OUTPUT_DIM = 1

    key = jax.random.PRNGKey(0)
    k_feat, k_par, k_bfeat = jax.random.split(key, 3)

    # ---- single graph: 8 segments, 200 total rows (one 200-row tile) --------
    segment_sizes = jnp.array([20, 35, 17, 40, 28, 22, 31, 7], dtype=jnp.int32)
    n_seg = int(segment_sizes.shape[0])
    n_rows = 200
    features = jax.random.normal(k_feat, (n_rows, INPUT_DIM), dtype=jnp.float32)
    params = _init_params(k_par, INPUT_DIM, HIDDEN_DIM, OUTPUT_DIM)

    fwd = jax.jit(segment_sum_mlp)          # wrapper has no host syncs -> jits cleanly
    out = jax.block_until_ready(fwd(segment_sizes, features, params))

    ref_bf16 = _reference(segment_sizes, features, params, mxu_bf16=True)
    ref_f32 = _reference(segment_sizes, features, params, mxu_bf16=False)

    assert out.shape == (n_seg,)
    # Tight check against a reference using the same bf16 MXU operands.
    assert jnp.allclose(out, ref_bf16, atol=1e-2, rtol=1e-2), (out, ref_bf16)
    # Loose semantic check against the full-f32 PyTorch-equivalent forward.
    assert jnp.allclose(out, ref_f32, atol=0.5, rtol=0.1), (out, ref_f32)

    # ---- batched graphs: B=3 graphs in one pallas_call (batch axis parallel) --
    B = 3
    bsizes = jnp.stack([
        jnp.array([20, 35, 17, 40, 28, 22, 31, 7], dtype=jnp.int32),
        jnp.array([25, 25, 25, 25, 25, 25, 25, 25], dtype=jnp.int32),
        jnp.array([1, 60, 9, 30, 44, 16, 28, 12], dtype=jnp.int32),
    ])                                                   # each sums to 200
    bfeat = jax.random.normal(k_bfeat, (B, n_rows, INPUT_DIM), dtype=jnp.float32)

    bfwd = jax.jit(segment_sum_mlp_batched)
    bout = jax.block_until_ready(bfwd(bsizes, bfeat, params))
    bref = jnp.stack([_reference(bsizes[i], bfeat[i], params, mxu_bf16=True)
                      for i in range(B)])

    assert bout.shape == (B, n_seg)
    assert jnp.allclose(bout, bref, atol=1e-2, rtol=1e-2), (bout, bref)

    print("KERNEL_OK")
</pallas_src>

<mosaic_0001>
module attributes {stable_mosaic.version = 11 : i64} {
  func.func @_segment_mlp_kernel(%arg0: i32, %arg1: i32, %arg2: memref<1x1x200xi32, #tpu.memory_space<vmem>>, %arg3: memref<1x200x64xf32, #tpu.memory_space<vmem>>, %arg4: memref<448x128xbf16, #tpu.memory_space<vmem>>, %arg5: memref<8x128xf32, #tpu.memory_space<vmem>>, %arg6: memref<1x1x8xf32, #tpu.memory_space<vmem>>, %arg7: memref<8x128xf32, #tpu.memory_space<vmem>>) attributes {dimension_semantics = [#tpu.dimension_semantics<parallel>, #tpu.dimension_semantics<arbitrary>], iteration_bounds = array<i64: 1, 1>, scalar_prefetch = 0 : i64, scratch_operands = 1 : i64, tpu.core_type = #tpu.core_type<tc>, window_params = [{transform_indices = @transform_0, window_bounds = array<i64: 1, 1, 200>}, {transform_indices = @transform_1, window_bounds = array<i64: 1, 200, 64>}, {pipeline_mode = #tpu.pipeline_mode<synchronous>, transform_indices = @transform_2, window_bounds = array<i64: 448, 128>}, {pipeline_mode = #tpu.pipeline_mode<synchronous>, transform_indices = @transform_3, window_bounds = array<i64: 8, 128>}, {transform_indices = @transform_4, window_bounds = array<i64: 1, 1, 8>}]} {
    %c0_i32 = arith.constant 0 : i32
    %0 = arith.cmpi eq, %arg1, %c0_i32 : i32
    %1 = arith.extui %0 : i1 to i32
    %c0_i32_0 = arith.constant 0 : i32
    %2 = arith.cmpi ne, %1, %c0_i32_0 : i32
    scf.if %2 {
      %cst_24 = arith.constant 0.000000e+00 : f32
      %38 = vector.broadcast %cst_24 : f32 to vector<8x128xf32>
      %c0_25 = arith.constant 0 : index
      %c0_26 = arith.constant 0 : index
      %39 = vector.load %arg7[%c0_25, %c0_26] : memref<8x128xf32, #tpu.memory_space<vmem>>, vector<8x128xf32>
      tpu.vector_store %arg7[%c0_25, %c0_26], %38 {strides = array<i32>} : memref<8x128xf32, #tpu.memory_space<vmem>>, vector<8x128xf32>,
    } else {
    }
    %c0 = arith.constant 0 : index
    %c0_1 = arith.constant 0 : index
    %c0_2 = arith.constant 0 : index
    %3 = vector.load %arg3[%c0, %c0_1, %c0_2] : memref<1x200x64xf32, #tpu.memory_space<vmem>>, vector<1x200x64xf32>
    %4 = vector.shape_cast %3 : vector<1x200x64xf32> to vector<200x64xf32>
    %5 = arith.truncf %4 : vector<200x64xf32> to vector<200x64xbf16>
    %c0_3 = arith.constant 0 : index
    %c0_4 = arith.constant 0 : index
    %6 = vector.load %arg4[%c0_3, %c0_4] : memref<448x128xbf16, #tpu.memory_space<vmem>>, vector<64x128xbf16>
    %c64 = arith.constant 64 : index
    %c0_5 = arith.constant 0 : index
    %7 = vector.load %arg4[%c64, %c0_5] : memref<448x128xbf16, #tpu.memory_space<vmem>>, vector<128x128xbf16>
    %c0_6 = arith.constant 0 : index
    %c0_7 = arith.constant 0 : index
    %8 = vector.load %arg5[%c0_6, %c0_7] : memref<8x128xf32, #tpu.memory_space<vmem>>, vector<1x128xf32>
    %c1 = arith.constant 1 : index
    %c0_8 = arith.constant 0 : index
    %9 = vector.load %arg5[%c1, %c0_8] : memref<8x128xf32, #tpu.memory_space<vmem>>, vector<1x128xf32>
    %cst = arith.constant dense<0.000000e+00> : vector<200x128xf32>
    %10 = tpu.matmul %5, %6, %cst {dimension_numbers = #tpu.dot_dimension_numbers<[1], [0], [0], [1], [0, 0, 1, 1], [], []>} : vector<200x64xbf16>, vector<64x128xbf16>, vector<200x128xf32> -> vector<200x128xf32>
    %11 = vector.broadcast %8 : vector<1x128xf32> to vector<200x128xf32>
    %12 = arith.addf %10, %11 : vector<200x128xf32>
    %cst_9 = arith.constant 0.000000e+00 : f32
    %13 = vector.broadcast %cst_9 : f32 to vector<200x128xf32>
    %14 = arith.maximumf %12, %13 : vector<200x128xf32>
    %15 = arith.truncf %14 : vector<200x128xf32> to vector<200x128xbf16>
    %cst_10 = arith.constant dense<0.000000e+00> : vector<200x128xf32>
    %16 = tpu.matmul %15, %7, %cst_10 {dimension_numbers = #tpu.dot_dimension_numbers<[1], [0], [0], [1], [0, 0, 1, 1], [], []>} : vector<200x128xbf16>, vector<128x128xbf16>, vector<200x128xf32> -> vector<200x128xf32>
    %17 = vector.broadcast %9 : vector<1x128xf32> to vector<200x128xf32>
    %18 = arith.addf %16, %17 : vector<200x128xf32>
    %cst_11 = arith.constant 0.000000e+00 : f32
    %19 = vector.broadcast %cst_11 : f32 to vector<200x128xf32>
    %20 = arith.maximumf %18, %19 : vector<200x128xf32>
    %c0_12 = arith.constant 0 : index
    %c0_13 = arith.constant 0 : index
    %c0_14 = arith.constant 0 : index
    %21 = vector.load %arg2[%c0_12, %c0_13, %c0_14] : memref<1x1x200xi32, #tpu.memory_space<vmem>>, vector<1x1x200xi32>
    %22 = vector.shape_cast %21 : vector<1x1x200xi32> to vector<1x200xi32>
    %23 = tpu.iota {dimensions = array<i32: 0>} : vector<8x200xi32>
    %24 = vector.broadcast %22 : vector<1x200xi32> to vector<8x200xi32>
    %25 = arith.cmpi eq, %23, %24 : vector<8x200xi32>
    %cst_15 = arith.constant 1.000000e+00 : f32
    %cst_16 = arith.constant 0.000000e+00 : f32
    %26 = vector.broadcast %cst_15 : f32 to vector<8x200xf32>
    %27 = vector.broadcast %cst_16 : f32 to vector<8x200xf32>
    %28 = arith.select %25, %26, %27 : vector<8x200xi1>, vector<8x200xf32>
    %29 = arith.truncf %28 : vector<8x200xf32> to vector<8x200xbf16>
    %c0_17 = arith.constant 0 : index
    %c0_18 = arith.constant 0 : index
    %30 = vector.load %arg7[%c0_17, %c0_18] : memref<8x128xf32, #tpu.memory_space<vmem>>, vector<8x128xf32>
    %31 = arith.truncf %20 : vector<200x128xf32> to vector<200x128xbf16>
    %cst_19 = arith.constant dense<0.000000e+00> : vector<8x128xf32>
    %32 = tpu.matmul %29, %31, %cst_19 {dimension_numbers = #tpu.dot_dimension_numbers<[1], [0], [0], [1], [0, 0, 1, 1], [], []>} : vector<8x200xbf16>, vector<200x128xbf16>, vector<8x128xf32> -> vector<8x128xf32>
    %33 = arith.addf %30, %32 : vector<8x128xf32>
    %c0_20 = arith.constant 0 : index
    %c0_21 = arith.constant 0 : index
    %34 = vector.load %arg7[%c0_20, %c0_21] : memref<8x128xf32, #tpu.memory_space<vmem>>, vector<8x128xf32>
    tpu.vector_store %arg7[%c0_20, %c0_21], %33 {strides = array<i32>} : memref<8x128xf32, #tpu.memory_space<vmem>>, vector<8x128xf32>,
    %c0_i32_22 = arith.constant 0 : i32
    %35 = arith.cmpi eq, %arg1, %c0_i32_22 : i32
    %36 = arith.extui %35 : i1 to i32
    %c0_i32_23 = arith.constant 0 : i32
    %37 = arith.cmpi ne, %36, %c0_i32_23 : i32
    scf.if %37 {
      %c192 = arith.constant 192 : index
      %c0_24 = arith.constant 0 : index
      %38 = vector.load %arg4[%c192, %c0_24] : memref<448x128xbf16, #tpu.memory_space<vmem>>, vector<128x128xbf16>
      %c320 = arith.constant 320 : index
      %c0_25 = arith.constant 0 : index
      %39 = vector.load %arg4[%c320, %c0_25] : memref<448x128xbf16, #tpu.memory_space<vmem>>, vector<128x128xbf16>
      %c2 = arith.constant 2 : index
      %c0_26 = arith.constant 0 : index
      %40 = vector.load %arg5[%c2, %c0_26] : memref<8x128xf32, #tpu.memory_space<vmem>>, vector<1x128xf32>
      %c3 = arith.constant 3 : index
      %c0_27 = arith.constant 0 : index
      %41 = vector.load %arg5[%c3, %c0_27] : memref<8x128xf32, #tpu.memory_space<vmem>>, vector<1x128xf32>
      %c4 = arith.constant 4 : index
      %c0_28 = arith.constant 0 : index
      %42 = vector.load %arg5[%c4, %c0_28] : memref<8x128xf32, #tpu.memory_space<vmem>>, vector<1x128xf32>
      %c5 = arith.constant 5 : index
      %c0_29 = arith.constant 0 : index
      %43 = vector.load %arg5[%c5, %c0_29] : memref<8x128xf32, #tpu.memory_space<vmem>>, vector<1x1xf32>
      %c0_30 = arith.constant 0 : index
      %c0_31 = arith.constant 0 : index
      %44 = vector.load %arg7[%c0_30, %c0_31] : memref<8x128xf32, #tpu.memory_space<vmem>>, vector<8x128xf32>
      %45 = arith.truncf %44 : vector<8x128xf32> to vector<8x128xbf16>
      %cst_32 = arith.constant dense<0.000000e+00> : vector<8x128xf32>
      %46 = tpu.matmul %45, %38, %cst_32 {dimension_numbers = #tpu.dot_dimension_numbers<[1], [0], [0], [1], [0, 0, 1, 1], [], []>} : vector<8x128xbf16>, vector<128x128xbf16>, vector<8x128xf32> -> vector<8x128xf32>
      %47 = vector.broadcast %40 : vector<1x128xf32> to vector<8x128xf32>
      %48 = arith.addf %46, %47 : vector<8x128xf32>
      %cst_33 = arith.constant 0.000000e+00 : f32
      %49 = vector.broadcast %cst_33 : f32 to vector<8x128xf32>
      %50 = arith.maximumf %48, %49 : vector<8x128xf32>
      %51 = arith.addf %50, %44 : vector<8x128xf32>
      %52 = arith.truncf %51 : vector<8x128xf32> to vector<8x128xbf16>
      %cst_34 = arith.constant dense<0.000000e+00> : vector<8x128xf32>
      %53 = tpu.matmul %52, %39, %cst_34 {dimension_numbers = #tpu.dot_dimension_numbers<[1], [0], [0], [1], [0, 0, 1, 1], [], []>} : vector<8x128xbf16>, vector<128x128xbf16>, vector<8x128xf32> -> vector<8x128xf32>
      %54 = vector.broadcast %41 : vector<1x128xf32> to vector<8x128xf32>
      %55 = arith.addf %53, %54 : vector<8x128xf32>
      %cst_35 = arith.constant 0.000000e+00 : f32
      %56 = vector.broadcast %cst_35 : f32 to vector<8x128xf32>
      %57 = arith.maximumf %55, %56 : vector<8x128xf32>
      %58 = arith.addf %57, %51 : vector<8x128xf32>
      %59 = arith.truncf %42 : vector<1x128xf32> to vector<1x128xbf16>
      %60 = arith.truncf %58 : vector<8x128xf32> to vector<8x128xbf16>
      %cst_36 = arith.constant dense<0.000000e+00> : vector<1x8xf32>
      %61 = tpu.matmul %59, %60, %cst_36 {dimension_numbers = #tpu.dot_dimension_numbers<[1], [1], [0], [0], [0, 0, 1, 0], [], []>} : vector<1x128xbf16>, vector<8x128xbf16>, vector<1x8xf32> -> vector<1x8xf32>
      %62 = vector.broadcast %43 : vector<1x1xf32> to vector<1x8xf32>
      %63 = arith.addf %61, %62 : vector<1x8xf32>
      %c0_37 = arith.constant 0 : index
      %c0_38 = arith.constant 0 : index
      %c0_39 = arith.constant 0 : index
      %64 = vector.load %arg6[%c0_37, %c0_38, %c0_39] : memref<1x1x8xf32, #tpu.memory_space<vmem>>, vector<1x1x8xf32>
      %65 = vector.shape_cast %64 : vector<1x1x8xf32> to vector<1x8xf32>
      %66 = vector.shape_cast %63 : vector<1x8xf32> to vector<1x1x8xf32>
      tpu.vector_store %arg6[%c0_37, %c0_38, %c0_39], %66 {strides = array<i32>} : memref<1x1x8xf32, #tpu.memory_space<vmem>>, vector<1x1x8xf32>,
    } else {
    }
    return
  }
  func.func @transform_0(%arg0: i32, %arg1: i32) -> (i32, i32, i32) {
    %c0_i32 = arith.constant 0 : i32
    %c0_i32_0 = arith.constant 0 : i32
    return %arg0, %c0_i32, %arg1 : i32, i32, i32
  }
  func.func @transform_1(%arg0: i32, %arg1: i32) -> (i32, i32, i32) {
    %c0_i32 = arith.constant 0 : i32
    %c0_i32_0 = arith.constant 0 : i32
    return %arg0, %arg1, %c0_i32 : i32, i32, i32
  }
  func.func @transform_2(%arg0: i32, %arg1: i32) -> (i32, i32) {
    %c0_i32 = arith.constant 0 : i32
    %c0_i32_0 = arith.constant 0 : i32
    %c0_i32_1 = arith.constant 0 : i32
    return %c0_i32, %c0_i32_0 : i32, i32
  }
  func.func @transform_3(%arg0: i32, %arg1: i32) -> (i32, i32) {
    %c0_i32 = arith.constant 0 : i32
    %c0_i32_0 = arith.constant 0 : i32
    %c0_i32_1 = arith.constant 0 : i32
    return %c0_i32, %c0_i32_0 : i32, i32
  }
  func.func @transform_4(%arg0: i32, %arg1: i32) -> (i32, i32, i32) {
    %c0_i32 = arith.constant 0 : i32
    %c0_i32_0 = arith.constant 0 : i32
    %c0_i32_1 = arith.constant 0 : i32
    return %arg0, %c0_i32, %c0_i32_0 : i32, i32, i32
  }
}

</mosaic_0001>

<bundles_post_ra>
// kernel: segment_sum_mlp.1
= control target key start
LH: loop header
LB: loop body
LE: loop exit
PB: predicated region body
PF: predicated region fallthrough
CT: control target
= control target key end

     0   :  { %v1255_v1 = vmov 0.0   ;;  %vm1256_vm0 = vmmov 0   ;;  %vm116_vm1 = vcmask 523264   ;;  %s1659_s0 = inlined_call_operand.vmem [shape: s32[1,1,200], index: 0, kind: input, shape index: {}]   ;;  %s1660_s1 = inlined_call_operand.vmem [shape: f32[1,200,64], index: 1, kind: input, shape index: {}]   ;;  %s1661_s2 = inlined_call_operand.vmem [shape: bf16[448,128], index: 2, kind: input, shape index: {}]   ;;  %s1662_s3 = inlined_call_operand.vmem [shape: f32[8,128], index: 3, kind: input, shape index: {}]   ;;  %s1663_s4 = inlined_call_operand.hbm [shape: f32[1,1,8], index: 4, kind: output, shape index: {}]  }
   0x1   :  { %v1203_v0 = vld [vmem:[%s1661_s2] sm:$0xff]   ;;  %1023 = vmatprep.subr.bf16.mxu0 %v1255_v1  ;;  %1083 = vmatprep.subr.bf16.mxu1 %v1255_v1  ;;  %v1204_v2 = vld [vmem:[%s1661_s2 + $0x8] sm:$0xff]   ;;  %v1205_v3 = vld [vmem:[%s1661_s2 + $0x10] sm:$0xff]  }
   0x2   :  { %1024 = vmatpush3.bf16.msra.mxu0 %v1203_v0  ;;  %1031 = vmatprep.mubr.msk.bf16.mxu0 %vm1256_vm0, %v1255_v1  ;;  %v1206_v4 = vld [vmem:[%s1661_s2 + $0x18] sm:$0xff]   ;;  %v24_v5 = vld [vmem:[%s1660_s1] sm:$0xff]  ;;  %v25_v6 = vld [vmem:[%s1660_s1 + $0x8] sm:$0xff] }
   0x3   :  { %1025 = vmatprep.subr.bf16.mxu0 %v1255_v1  ;;  %1099 = vmatprep.mubr.msk.bf16.mxu1 %vm1256_vm0, %v1255_v1  ;;  %v49_v7 = vpack.c.bf16 %v25_v6, %v24_v5  ;;  %v1207_v8 = vld [vmem:[%s1661_s2 + $0x20] sm:$0xff]   ;;  %v1208_v9 = vld [vmem:[%s1661_s2 + $0x28] sm:$0xff]   ;;  %v26_v10 = vld [vmem:[%s1660_s1 + $0x10] sm:$0xff] }
   0x4   :  { %1084 = vmatpush3.bf16.msra.mxu1 %v1207_v8  ;;  %v27_v11 = vld [vmem:[%s1660_s1 + $0x18] sm:$0xff]  ;;  %v1209_v12 = vld [vmem:[%s1661_s2 + $0x30] sm:$0xff]   ;;  %v28_v15 = vld [vmem:[%s1660_s1 + $0x20] sm:$0xff] }
   0x5   :  { %1085 = vmatprep.subr.bf16.mxu1 %v1255_v1  ;;  %v50_v13 = vpack.c.bf16 %v27_v11, %v26_v10  ;;  %v1210_v14 = vld [vmem:[%s1661_s2 + $0x38] sm:$0xff]   ;;  %v29_v16 = vld [vmem:[%s1660_s1 + $0x28] sm:$0xff]  ;;  %v1211_v17 = vld [vmem:[%s1661_s2 + $0x40] sm:$0xff]  }
   0x6   :  { %1026 = vmatpush3.bf16.msra.mxu0 %v1204_v2  ;;  %v51_v18 = vpack.c.bf16 %v29_v16, %v28_v15 }
   0x7   :  { %1027 = vmatprep.subr.bf16.mxu0 %v1255_v1 }
   0x8   :  { %1086 = vmatpush3.bf16.msra.mxu1 %v1208_v9 }
   0x9   :  { %1087 = vmatprep.subr.bf16.mxu1 %v1255_v1 }
   0xa   :  { %1028 = vmatpush3.bf16.msra.mxu0 %v1205_v3 }
   0xb   :  { %1029 = vmatprep.subr.bf16.mxu0 %v1255_v1 }
   0xc   :  { %1088 = vmatpush3.bf16.msra.mxu1 %v1209_v12 }
   0xd   :  { %1089 = vmatprep.subr.bf16.mxu1 %v1255_v1 }
   0xe   :  { %1030 = vmatpush3.bf16.msra.mxu0 %v1206_v4 }
  0x10   :  { %1090 = vmatpush3.bf16.msra.mxu1 %v1210_v14 }
  0x11   :  { %1032 = vmatmul.mubr.msk.bf16.vlgmr.msra.gmra.mrb[0].mxu0 %vm116_vm1, %v49_v7  ;;  %1091 = vmatprep.subr.bf16.mxu1 %v1255_v1 }
  0x12   :  { %1035 = vmatprep.mubr.msk.bf16.mxu0 %vm1256_vm0, %v1255_v1 }
  0x19   :  { %1036 = vmatmul.mubr.msk.bf16.gmra.mrb[4].mxu0 %vm116_vm1, %v50_v13 }
  0x1a   :  { %1039 = vmatprep.mubr.msk.bf16.mxu0 %vm1256_vm0, %v1255_v1 }
  0x1b   :  { %9 = vsyncpa [#allocation4], 0  ;;  %1092 = vmatpush3.bf16.msra.mxu1 %v1211_v17  ;;  %v1212_v19 = vld [vmem:[%s1661_s2 + $0x48] sm:$0xff]   ;;  %v30_v20 = vld [vmem:[%s1660_s1 + $0x30] sm:$0xff]  ;;  %vm574_vm3 = vcmask 588800   ;;  %vm578_vm5 = vcmask 1043456  }
  0x1c   :  { %1093 = vmatprep.subr.bf16.mxu1 %v1255_v1  ;;  %v31_v21 = vld [vmem:[%s1660_s1 + $0x38] sm:$0xff]  ;;  %v32_v23 = vld [vmem:[%s1660_s1 + $0x40] sm:$0xff]  ;;  %v33_v24 = vld [vmem:[%s1660_s1 + $0x48] sm:$0xff]  ;;  %s1259_s26 = smov [#allocation3]   ;;  %vm901_vm7 = vcmask 57344  }
  0x1d   :  { %v52_v22 = vpack.c.bf16 %v31_v21, %v30_v20  ;;  %v53_v25 = vpack.c.bf16 %v33_v24, %v32_v23  ;;  %v34_v26 = vld [vmem:[%s1660_s1 + $0x50] sm:$0xff]  ;;  %v35_v27 = vld [vmem:[%s1660_s1 + $0x58] sm:$0xff]  ;;  %v36_v29 = vld [vmem:[%s1660_s1 + $0x60] sm:$0xff]  ;;  %s909_s27 = sshll.u32 %s1259_s26, 4  ;;  %s910_s27 = int_to_ptr.vmem [resolvable:$true] %s909_s27 }
  0x1e   :  { %v54_v28 = vpack.c.bf16 %v35_v27, %v34_v26  ;;  %v37_v30 = vld [vmem:[%s1660_s1 + $0x68] sm:$0xff]  ;;  %v38_v32 = vld [vmem:[%s1660_s1 + $0x70] sm:$0xff]  ;;  %v39_v33 = vld [vmem:[%s1660_s1 + $0x78] sm:$0xff]  ;;  %s1231_s28 = scalar_lea.vmem %s910_s27, 16  ;;  %s1235_s29 = scalar_lea.vmem %s910_s27, 32 }
  0x1f   :  { %1094 = vmatpush3.bf16.msra.mxu1 %v1212_v19  ;;  %v55_v31 = vpack.c.bf16 %v37_v30, %v36_v29  ;;  %v56_v34 = vpack.c.bf16 %v39_v33, %v38_v32  ;;  %v40_v35 = vld [vmem:[%s1660_s1 + $0x80] sm:$0xff]  ;;  %v41_v36 = vld [vmem:[%s1660_s1 + $0x88] sm:$0xff]  ;;  %v42_v38 = vld [vmem:[%s1660_s1 + $0x90] sm:$0xff]  ;;  %p1232_p0 = scmp.ne.s32.totalorder %s910_s27, %s1231_s28  ;;  %p1236_p1 = scmp.lt.s32.totalorder %s910_s27, %s910_s27 }
  0x20   :  { %1095 = vmatprep.subr.bf16.mxu1 %v1255_v1  ;;  %v57_v37 = vpack.c.bf16 %v41_v36, %v40_v35  ;;  %v43_v39 = vld [vmem:[%s1660_s1 + $0x98] sm:$0xff]  ;;  %v44_v41 = vld [vmem:[%s1660_s1 + $0xa0] sm:$0xff]  ;;  %v45_v42 = vld [vmem:[%s1660_s1 + $0xa8] sm:$0xff]  ;;  %p1237_p2 = scmp.lt.s32.totalorder %s1235_s29, %s1231_s28 }
  0x21   :  { %1040 = vmatmul.mubr.msk.bf16.gmra.mrb[8].mxu0 %vm116_vm1, %v51_v18  ;;  %v58_v40 = vpack.c.bf16 %v43_v39, %v42_v38  ;;  %v59_v43 = vpack.c.bf16 %v45_v42, %v44_v41  ;;  %v46_v44 = vld [vmem:[%s1660_s1 + $0xb0] sm:$0xff]  ;;  %v47_v45 = vld [vmem:[%s1660_s1 + $0xb8] sm:$0xff]  ;;  %v48_v49 = vld [vmem:[%s1660_s1 + $0xc0] sm:$0xff] }
  0x22   :  { %1043 = vmatprep.mubr.msk.bf16.mxu0 %vm1256_vm0, %v1255_v1  ;;  %v1213_v46 = vld [vmem:[%s1661_s2 + $0x50] sm:$0xff]   ;;  %v60_v47 = vpack.c.bf16 %v47_v45, %v46_v44  ;;  %v1214_v48 = vld [vmem:[%s1661_s2 + $0x58] sm:$0xff]   ;;  %v61_v50 = vpack.c.bf16 %v48_v49, %v48_v49  ;;  %v1453_v51 = vld [vmem:[%s1662_s3] ss:$0 sm:$0xff]  ;;  %p1238_p3 = por %p1237_p2, %p1236_p1 }
  0x23   :  { %1096 = vmatpush3.bf16.msra.mxu1 %v1213_v46 }
  0x24   :  { %1097 = vmatprep.subr.bf16.mxu1 %v1255_v1  ;;  %p1239_p4 = pnand %p1238_p3, %p1232_p0 }
  0x27   :  { %1098 = vmatpush3.bf16.msra.mxu1 %v1214_v48 }
  0x28   :  { %1151 = vmatprep.subr.bf16.mxu1 %v1255_v1 }
  0x29   :  { %1044 = vmatmul.mubr.msk.bf16.gmra.mrb[12].mxu0 %vm116_vm1, %v52_v22 }
  0x2a   :  { %1047 = vmatprep.mubr.msk.bf16.mxu0 %vm1256_vm0, %v1255_v1 }
  0x31   :  { %1048 = vmatmul.mubr.msk.bf16.gmra.mrb[16].mxu0 %vm116_vm1, %v53_v25 }
  0x32   :  { %1051 = vmatprep.mubr.msk.bf16.mxu0 %vm1256_vm0, %v1255_v1 }
  0x39   :  { %1052 = vmatmul.mubr.msk.bf16.gmra.mrb[20].mxu0 %vm116_vm1, %v54_v28 }
  0x3a   :  { %1055 = vmatprep.mubr.msk.bf16.mxu0 %vm1256_vm0, %v1255_v1 }
  0x41   :  { %1056 = vmatmul.mubr.msk.bf16.gmra.mrb[24].mxu0 %vm116_vm1, %v55_v31 }
  0x42   :  { %1059 = vmatprep.mubr.msk.bf16.mxu0 %vm1256_vm0, %v1255_v1 }
  0x49   :  { %1060 = vmatmul.mubr.msk.bf16.gmra.mrb[28].mxu0 %vm116_vm1, %v56_v34 }
  0x4a   :  { %1063 = vmatprep.mubr.msk.bf16.mxu0 %vm1256_vm0, %v1255_v1 }
  0x51   :  { %1064 = vmatmul.mubr.msk.bf16.gmra.mrb[32].mxu0 %vm116_vm1, %v57_v37 }
  0x52   :  { %1067 = vmatprep.mubr.msk.bf16.mxu0 %vm1256_vm0, %v1255_v1 }
  0x59   :  { %1068 = vmatmul.mubr.msk.bf16.gmra.mrb[36].mxu0 %vm116_vm1, %v58_v40 }
  0x5a   :  { %1071 = vmatprep.mubr.msk.bf16.mxu0 %vm1256_vm0, %v1255_v1 }
  0x61   :  { %1072 = vmatmul.mubr.msk.bf16.gmra.mrb[40].mxu0 %vm116_vm1, %v59_v43 }
  0x62   :  { %1075 = vmatprep.mubr.msk.bf16.mxu0 %vm1256_vm0, %v1255_v1 }
  0x69   :  { %1076 = vmatmul.mubr.msk.bf16.gmra.mrb[44].mxu0 %vm116_vm1, %v60_v47 }
  0x6a   :  { %1079 = vmatprep.mubr.msk.bf16.mxu0 %vm1256_vm0, %v1255_v1 }
  0x71   :  { %1080 = vmatmul.mubr.msk.bf16.gmra.mrb[48].mxu0 %vm116_vm1, %v61_v50 }
  0xe4   :  { %v190_v52 = vpop.f32.mrb[0].mxu0 }
  0xe5   :  { %v191_v53 = vadd.f32 %v1453_v51, %v190_v52  ;;  %v1033_v54 = vpop.f32.mrb[1].mxu0 }
  0xe6   :  { %v193_v55 = vpop.f32.mrb[2].mxu0 }
  0xe7   :  { %v194_v56 = vadd.f32 %v1453_v51, %v193_v55  ;;  %v1034_v57 = vpop.f32.mrb[3].mxu0  ;;  %v292_v58 = vmax.f32 %v191_v53, 0.0 }
  0xe9   :  { %v293_v59 = vmax.f32 %v194_v56, 0.0 }
  0xeb   :  { %v317_v60 = vpack.c.bf16 %v293_v59, %v292_v58 }
  0xec   :  { %v198_v61 = vpop.f32.mrb[4].mxu0 }
  0xed   :  { %v199_v62 = vadd.f32 %v1453_v51, %v198_v61  ;;  %v1037_v63 = vpop.f32.mrb[5].mxu0  ;;  %1100 = vmatmul.mubr.bf16.vlgmr.msra.gmra.mrb[0].mxu1 %v317_v60 }
  0xee   :  { %v201_v0 = vpop.f32.mrb[6].mxu0  ;;  %1103 = vmatprep.mubr.msk.bf16.mxu1 %vm1256_vm0, %v1255_v1 }
  0xef   :  { %v202_v2 = vadd.f32 %v1453_v51, %v201_v0  ;;  %v1038_v3 = vpop.f32.mrb[7].mxu0  ;;  %v294_v4 = vmax.f32 %v199_v62, 0.0 }
  0xf1   :  { %v295_v5 = vmax.f32 %v202_v2, 0.0 }
  0xf3   :  { %v318_v6 = vpack.c.bf16 %v295_v5, %v294_v4 }
  0xf4   :  { %v206_v7 = vpop.f32.mrb[8].mxu0 }
  0xf5   :  { %v207_v8 = vadd.f32 %v1453_v51, %v206_v7  ;;  %v1041_v9 = vpop.f32.mrb[9].mxu0  ;;  %1104 = vmatmul.mubr.bf16.gmra.mrb[4].mxu1 %v318_v6 }
  0xf6   :  { %v209_v10 = vpop.f32.mrb[10].mxu0  ;;  %1107 = vmatprep.mubr.msk.bf16.mxu1 %vm1256_vm0, %v1255_v1 }
  0xf7   :  { %v210_v11 = vadd.f32 %v1453_v51, %v209_v10  ;;  %v1042_v12 = vpop.f32.mrb[11].mxu0  ;;  %v296_v13 = vmax.f32 %v207_v8, 0.0 }
  0xf9   :  { %v297_v14 = vmax.f32 %v210_v11, 0.0 }
  0xfb   :  { %v319_v15 = vpack.c.bf16 %v297_v14, %v296_v13 }
  0xfc   :  { %v214_v16 = vpop.f32.mrb[12].mxu0 }
  0xfd   :  { %v215_v17 = vadd.f32 %v1453_v51, %v214_v16  ;;  %v1045_v18 = vpop.f32.mrb[13].mxu0  ;;  %1108 = vmatmul.mubr.bf16.gmra.mrb[8].mxu1 %v319_v15 }
  0xfe   :  { %v217_v19 = vpop.f32.mrb[14].mxu0  ;;  %1111 = vmatprep.mubr.msk.bf16.mxu1 %vm1256_vm0, %v1255_v1 }
  0xff   :  { %v218_v20 = vadd.f32 %v1453_v51, %v217_v19  ;;  %v1046_v21 = vpop.f32.mrb[15].mxu0  ;;  %v298_v22 = vmax.f32 %v215_v17, 0.0 }
 0x101   :  { %v299_v23 = vmax.f32 %v218_v20, 0.0 }
 0x103   :  { %v320_v24 = vpack.c.bf16 %v299_v23, %v298_v22 }
 0x104   :  { %v222_v25 = vpop.f32.mrb[16].mxu0 }
 0x105   :  { %v223_v26 = vadd.f32 %v1453_v51, %v222_v25  ;;  %v1049_v27 = vpop.f32.mrb[17].mxu0  ;;  %1112 = vmatmul.mubr.bf16.gmra.mrb[12].mxu1 %v320_v24 }
 0x106   :  { %v225_v28 = vpop.f32.mrb[18].mxu0  ;;  %1115 = vmatprep.mubr.msk.bf16.mxu1 %vm1256_vm0, %v1255_v1 }
 0x107   :  { %v226_v29 = vadd.f32 %v1453_v51, %v225_v28  ;;  %v1050_v30 = vpop.f32.mrb[19].mxu0  ;;  %v300_v31 = vmax.f32 %v223_v26, 0.0 }
 0x109   :  { %v301_v32 = vmax.f32 %v226_v29, 0.0 }
 0x10b   :  { %v321_v33 = vpack.c.bf16 %v301_v32, %v300_v31 }
 0x10c   :  { %v230_v34 = vpop.f32.mrb[20].mxu0 }
 0x10d   :  { %v231_v35 = vadd.f32 %v1453_v51, %v230_v34  ;;  %v1053_v36 = vpop.f32.mrb[21].mxu0  ;;  %1116 = vmatmul.mubr.bf16.gmra.mrb[16].mxu1 %v321_v33 }
 0x10e   :  { %v233_v37 = vpop.f32.mrb[22].mxu0  ;;  %1119 = vmatprep.mubr.msk.bf16.mxu1 %vm1256_vm0, %v1255_v1 }
 0x10f   :  { %v234_v38 = vadd.f32 %v1453_v51, %v233_v37  ;;  %v1054_v39 = vpop.f32.mrb[23].mxu0  ;;  %v302_v40 = vmax.f32 %v231_v35, 0.0 }
 0x111   :  { %v303_v41 = vmax.f32 %v234_v38, 0.0 }
 0x113   :  { %v322_v42 = vpack.c.bf16 %v303_v41, %v302_v40  ;;  %v1257_v41 = vmov 0  }
 0x114   :  { %v238_v43 = vpop.f32.mrb[24].mxu0  ;;  %582 = vmatprep.subr.bf16.mxu0 %v1257_v41  ;;  %1202 = vset.pattern.permute.xlu0 %v1257_v41 }
 0x115   :  { %v239_v44 = vadd.f32 %v1453_v51, %v238_v43  ;;  %v1057_v45 = vpop.f32.mrb[25].mxu0  ;;  %1120 = vmatmul.mubr.bf16.gmra.mrb[20].mxu1 %v322_v42  ;;  %v544_v43 = vlaneseq }
 0x116   :  { %v241_v46 = vpop.f32.mrb[26].mxu0  ;;  %1123 = vmatprep.mubr.msk.bf16.mxu1 %vm1256_vm0, %v1255_v1  ;;  %v543_v45 = vld [vmem:[%s1659_s0] sm:$0x3] }
 0x117   :  { %v242_v47 = vadd.f32 %v1453_v51, %v241_v46  ;;  %v1058_v48 = vpop.f32.mrb[27].mxu0  ;;  %v304_v49 = vmax.f32 %v239_v44, 0.0 }
 0x119   :  { %v305_v50 = vmax.f32 %v242_v47, 0.0 }
 0x11b   :  { %v323_v52 = vpack.c.bf16 %v305_v50, %v304_v49 }
 0x11c   :  { %v246_v53 = vpop.f32.mrb[28].mxu0 }
 0x11d   :  { %v247_v54 = vadd.f32 %v1453_v51, %v246_v53  ;;  %v1061_v55 = vpop.f32.mrb[29].mxu0  ;;  %1124 = vmatmul.mubr.bf16.gmra.mrb[24].mxu1 %v323_v52  ;;  %v1215_v52 = vld [vmem:[%s1661_s2 + $0x60] sm:$0xff]   ;;  %v1216_v53 = vld [vmem:[%s1661_s2 + $0x68] sm:$0xff]  }
 0x11e   :  { %v249_v56 = vpop.f32.mrb[30].mxu0  ;;  %1127 = vmatprep.mubr.msk.bf16.mxu1 %vm1256_vm0, %v1255_v1  ;;  %1152 = vmatpush3.bf16.msra.mxu1 %v1215_v52  ;;  %v1218_v55 = vld [vmem:[%s1661_s2 + $0x78] sm:$0xff]  }
 0x11f   :  { %v250_v57 = vadd.f32 %v1453_v51, %v249_v56  ;;  %v1062_v58 = vpop.f32.mrb[31].mxu0  ;;  %v306_v59 = vmax.f32 %v247_v54, 0.0  ;;  %1153 = vmatprep.subr.bf16.mxu1 %v1255_v1  ;;  %v1217_v54 = vld [vmem:[%s1661_s2 + $0x70] sm:$0xff]   ;;  %v1219_v56 = vld [vmem:[%s1661_s2 + $0x80] sm:$0xff]  }
 0x120   :  { %v1546_v58 = vld [vmem:[%s1662_s3 + $0x1] ss:$0 sm:$0xff] }
 0x121   :  { %v307_v60 = vmax.f32 %v250_v57, 0.0  ;;  %v1220_v57 = vld [vmem:[%s1661_s2 + $0x88] sm:$0xff]  }
 0x122   :  { %1154 = vmatpush3.bf16.msra.mxu1 %v1216_v53 }
 0x123   :  { %v324_v61 = vpack.c.bf16 %v307_v60, %v306_v59  ;;  %1155 = vmatprep.subr.bf16.mxu1 %v1255_v1 }
 0x124   :  { %v254_v62 = vpop.f32.mrb[32].mxu0 }
 0x125   :  { %v255_v63 = vadd.f32 %v1453_v51, %v254_v62  ;;  %v1065_v0 = vpop.f32.mrb[33].mxu0  ;;  %1128 = vmatmul.mubr.bf16.gmra.mrb[28].mxu1 %v324_v61  ;;  %v1221_v62 = vld [vmem:[%s1661_s2 + $0x90] sm:$0xff]  }
 0x126   :  { %v257_v2 = vpop.f32.mrb[34].mxu0  ;;  %1131 = vmatprep.mubr.msk.bf16.mxu1 %vm1256_vm0, %v1255_v1  ;;  %1156 = vmatpush3.bf16.msra.mxu1 %v1217_v54 }
 0x127   :  { %v258_v3 = vadd.f32 %v1453_v51, %v257_v2  ;;  %v1066_v4 = vpop.f32.mrb[35].mxu0  ;;  %v308_v5 = vmax.f32 %v255_v63, 0.0  ;;  %1157 = vmatprep.subr.bf16.mxu1 %v1255_v1 }
 0x129   :  { %v309_v6 = vmax.f32 %v258_v3, 0.0 }
 0x12a   :  { %1158 = vmatpush3.bf16.msra.mxu1 %v1218_v55 }
 0x12b   :  { %v325_v7 = vpack.c.bf16 %v309_v6, %v308_v5  ;;  %1159 = vmatprep.subr.bf16.mxu1 %v1255_v1  ;;  %v1222_v5 = vld [vmem:[%s1661_s2 + $0x98] sm:$0xff]  }
 0x12c   :  { %v262_v8 = vpop.f32.mrb[36].mxu0 }
 0x12d   :  { %v263_v9 = vadd.f32 %v1453_v51, %v262_v8  ;;  %v1069_v10 = vpop.f32.mrb[37].mxu0  ;;  %1132 = vmatmul.mubr.bf16.gmra.mrb[32].mxu1 %v325_v7 }
 0x12e   :  { %v265_v11 = vpop.f32.mrb[38].mxu0  ;;  %1135 = vmatprep.mubr.msk.bf16.mxu1 %vm1256_vm0, %v1255_v1  ;;  %1160 = vmatpush3.bf16.msra.mxu1 %v1219_v56 }
 0x12f   :  { %v266_v12 = vadd.f32 %v1453_v51, %v265_v11  ;;  %v1070_v13 = vpop.f32.mrb[39].mxu0  ;;  %v310_v14 = vmax.f32 %v263_v9, 0.0  ;;  %1161 = vmatprep.subr.bf16.mxu1 %v1255_v1 }
 0x131   :  { %v311_v15 = vmax.f32 %v266_v12, 0.0 }
 0x132   :  { %1162 = vmatpush3.bf16.msra.mxu1 %v1220_v57 }
 0x133   :  { %v326_v16 = vpack.c.bf16 %v311_v15, %v310_v14  ;;  %1163 = vmatprep.subr.bf16.mxu1 %v1255_v1 }
 0x134   :  { %v270_v17 = vpop.f32.mrb[40].mxu0 }
 0x135   :  { %v271_v18 = vadd.f32 %v1453_v51, %v270_v17  ;;  %v1073_v19 = vpop.f32.mrb[41].mxu0  ;;  %1136 = vmatmul.mubr.bf16.gmra.mrb[36].mxu1 %v326_v16 }
 0x136   :  { %v273_v20 = vpop.f32.mrb[42].mxu0  ;;  %1139 = vmatprep.mubr.msk.bf16.mxu1 %vm1256_vm0, %v1255_v1  ;;  %1164 = vmatpush3.bf16.msra.mxu1 %v1221_v62 }
 0x137   :  { %v274_v21 = vadd.f32 %v1453_v51, %v273_v20  ;;  %v1074_v22 = vpop.f32.mrb[43].mxu0  ;;  %v312_v23 = vmax.f32 %v271_v18, 0.0  ;;  %1165 = vmatprep.subr.bf16.mxu1 %v1255_v1 }
 0x139   :  { %v313_v24 = vmax.f32 %v274_v21, 0.0 }
 0x13a   :  { %1166 = vmatpush3.bf16.msra.mxu1 %v1222_v5 }
 0x13b   :  { %v327_v25 = vpack.c.bf16 %v313_v24, %v312_v23  ;;  %1191 = vmatprep.subr.bf16.mxu1 %v1255_v1 }
 0x13c   :  { %v278_v26 = vpop.f32.mrb[44].mxu0 }
 0x13d   :  { %v279_v27 = vadd.f32 %v1453_v51, %v278_v26  ;;  %v1077_v28 = vpop.f32.mrb[45].mxu0  ;;  %1140 = vmatmul.mubr.bf16.gmra.mrb[40].mxu1 %v327_v25 }
 0x13e   :  { %v281_v29 = vpop.f32.mrb[46].mxu0  ;;  %1143 = vmatprep.mubr.msk.bf16.mxu1 %vm1256_vm0, %v1255_v1 }
 0x13f   :  { %v282_v30 = vadd.f32 %v1453_v51, %v281_v29  ;;  %v1078_v31 = vpop.f32.mrb[47].mxu0  ;;  %v314_v32 = vmax.f32 %v279_v27, 0.0 }
 0x141   :  { %v315_v33 = vmax.f32 %v282_v30, 0.0 }
 0x143   :  { %v328_v34 = vpack.c.bf16 %v315_v33, %v314_v32 }
 0x144   :  { %v286_v35 = vpop.f32.mrb[48].mxu0 }
 0x145   :  { %v287_v36 = vadd.f32 %v1453_v51, %v286_v35  ;;  %v1081_v37 = vpop.f32.mrb[49].mxu0  ;;  %1144 = vmatmul.mubr.bf16.gmra.mrb[44].mxu1 %v328_v34  ;;  %v1508_v51 = vshrl.u32 %v544_v43, 7 }
 0x146   :  { %v289_v38 = vpop.f32.mrb[50].mxu0  ;;  %1147 = vmatprep.mubr.msk.bf16.mxu1 %vm1256_vm0, %v1255_v1 }
 0x147   :  { %v316_v39 = vmax.f32 %v287_v36, 0.0  ;;  %v1082_v40 = vpop.f32.mrb[51].mxu0  ;;  %v552_v44 = vsub.s32 1, %v1508_v51  ;;  %v548_v47 = vsub.s32 0, %v1508_v51 }
 0x149   :  { %v329_v42 = vpack.c.bf16 %v316_v39, %v316_v39  ;;  %v553_v46 = vrot.slane %v543_v45, %v552_v44  ;;  %v1517_v49 = vrot.slane %v543_v45, %v548_v47 }
 0x14b   :  { %vm555_vm2 = vcmp.eq.s32.totalorder %v1508_v51, %v553_v46  ;;  %vm554_vm4 = vcmp.eq.s32.totalorder %v1508_v51, %v1517_v49  ;;  %v1225_v51 = vld [vmem:[%s1661_s2 + $0xb0] sm:$0xff]   ;;  %v1226_v49 = vld [vmem:[%s1661_s2 + $0xb8] sm:$0xff]  }
 0x14c   :  { %v557_v48 = vsel %vm555_vm2, 1.0, %v1255_v1  ;;  %vm945_vm6 = vmpackc.low %vm554_vm4, %vm554_vm4 }
 0x14d   :  { %1148 = vmatmul.mubr.bf16.gmra.mrb[48].mxu1 %v329_v42  ;;  %v559_v50 = vpack.c.bf16 %v557_v48, %v557_v48 }
 0x14e   :  { %1167 = vmatprep.mubr.msk.bf16.mxu1 %vm1256_vm0, %v1255_v1 }
 0x14f   :  { %944 = vmatprep.mubr.msk.bf16.mxu0 %vm574_vm3, %v559_v50 }
 0x1c0   :  { %v416_v59 = vpop.f32.mrb[0].mxu1 }
 0x1c1   :  { %v417_v60 = vadd.f32 %v1546_v58, %v416_v59  ;;  %v1101_v61 = vpop.f32.mrb[1].mxu1 }
 0x1c2   :  { %v419_v63 = vpop.f32.mrb[2].mxu1 }
 0x1c3   :  { %v420_v0 = vadd.f32 %v1546_v58, %v419_v63  ;;  %v1102_v2 = vpop.f32.mrb[3].mxu1  ;;  %v518_v3 = vmax.f32 %v417_v60, 0.0 }
 0x1c5   :  { %v519_v4 = vmax.f32 %v420_v0, 0.0 }
 0x1c7   :  { %v561_v6 = vpack.c.bf16 %v519_v4, %v518_v3 }
 0x1c8   :  { %v424_v7 = vpop.f32.mrb[4].mxu1 }
 0x1c9   :  { %v425_v8 = vadd.f32 %v1546_v58, %v424_v7  ;;  %v1105_v9 = vpop.f32.mrb[5].mxu1  ;;  %583 = vmatpush1.bf16.msra.mxu0 %v561_v6 }
 0x1ca   :  { %v427_v10 = vpop.f32.mrb[6].mxu1  ;;  %584 = vmatprep.subr.bf16.mxu0 %v1257_v41 }
 0x1cb   :  { %v428_v11 = vadd.f32 %v1546_v58, %v427_v10  ;;  %v1106_v12 = vpop.f32.mrb[7].mxu1  ;;  %v520_v13 = vmax.f32 %v425_v8, 0.0 }
 0x1cd   :  { %v521_v14 = vmax.f32 %v428_v11, 0.0 }
 0x1cf   :  { %v562_v15 = vpack.c.bf16 %v521_v14, %v520_v13 }
 0x1d0   :  { %v432_v16 = vpop.f32.mrb[8].mxu1 }
 0x1d1   :  { %v433_v17 = vadd.f32 %v1546_v58, %v432_v16  ;;  %v1109_v18 = vpop.f32.mrb[9].mxu1  ;;  %585 = vmatpush1.bf16.msra.mxu0 %v562_v15 }
 0x1d2   :  { %v435_v19 = vpop.f32.mrb[10].mxu1  ;;  %586 = vmatprep.subr.bf16.mxu0 %v1257_v41 }
 0x1d3   :  { %v436_v20 = vadd.f32 %v1546_v58, %v435_v19  ;;  %v1110_v21 = vpop.f32.mrb[11].mxu1  ;;  %v522_v22 = vmax.f32 %v433_v17, 0.0 }
 0x1d5   :  { %v523_v23 = vmax.f32 %v436_v20, 0.0 }
 0x1d7   :  { %v563_v24 = vpack.c.bf16 %v523_v23, %v522_v22 }
 0x1d8   :  { %v440_v25 = vpop.f32.mrb[12].mxu1 }
 0x1d9   :  { %v441_v26 = vadd.f32 %v1546_v58, %v440_v25  ;;  %v1113_v27 = vpop.f32.mrb[13].mxu1  ;;  %587 = vmatpush1.bf16.msra.mxu0 %v563_v24 }
 0x1da   :  { %v443_v28 = vpop.f32.mrb[14].mxu1  ;;  %588 = vmatprep.subr.bf16.mxu0 %v1257_v41 }
 0x1db   :  { %v444_v29 = vadd.f32 %v1546_v58, %v443_v28  ;;  %v1114_v30 = vpop.f32.mrb[15].mxu1  ;;  %v524_v31 = vmax.f32 %v441_v26, 0.0 }
 0x1dd   :  { %v525_v32 = vmax.f32 %v444_v29, 0.0 }
 0x1df   :  { %v564_v33 = vpack.c.bf16 %v525_v32, %v524_v31 }
 0x1e0   :  { %v448_v34 = vpop.f32.mrb[16].mxu1 }
 0x1e1   :  { %v449_v35 = vadd.f32 %v1546_v58, %v448_v34  ;;  %v1117_v36 = vpop.f32.mrb[17].mxu1  ;;  %589 = vmatpush1.bf16.msra.mxu0 %v564_v33 }
 0x1e2   :  { %v451_v37 = vpop.f32.mrb[18].mxu1  ;;  %590 = vmatprep.subr.bf16.mxu0 %v1257_v41 }
 0x1e3   :  { %v452_v38 = vadd.f32 %v1546_v58, %v451_v37  ;;  %v1118_v39 = vpop.f32.mrb[19].mxu1  ;;  %v526_v40 = vmax.f32 %v449_v35, 0.0 }
 0x1e5   :  { %v527_v42 = vmax.f32 %v452_v38, 0.0 }
 0x1e7   :  { %v565_v43 = vpack.c.bf16 %v527_v42, %v526_v40 }
 0x1e8   :  { %v456_v44 = vpop.f32.mrb[20].mxu1 }
 0x1e9   :  { %v457_v45 = vadd.f32 %v1546_v58, %v456_v44  ;;  %v1121_v46 = vpop.f32.mrb[21].mxu1  ;;  %591 = vmatpush1.bf16.msra.mxu0 %v565_v43 }
 0x1ea   :  { %v459_v47 = vpop.f32.mrb[22].mxu1  ;;  %592 = vmatprep.subr.bf16.mxu0 %v1257_v41 }
 0x1eb   :  { %v460_v48 = vadd.f32 %v1546_v58, %v459_v47  ;;  %v1122_v50 = vpop.f32.mrb[23].mxu1  ;;  %v528_v52 = vmax.f32 %v457_v45, 0.0 }
 0x1ed   :  { %v529_v53 = vmax.f32 %v460_v48, 0.0 }
 0x1ef   :  { %v566_v54 = vpack.c.bf16 %v529_v53, %v528_v52 }
 0x1f0   :  { %v464_v55 = vpop.f32.mrb[24].mxu1 }
 0x1f1   :  { %v465_v56 = vadd.f32 %v1546_v58, %v464_v55  ;;  %v1125_v57 = vpop.f32.mrb[25].mxu1  ;;  %593 = vmatpush1.bf16.msra.mxu0 %v566_v54 }
 0x1f2   :  { %v467_v59 = vpop.f32.mrb[26].mxu1  ;;  %594 = vmatprep.subr.bf16.mxu0 %v1257_v41 }
 0x1f3   :  { %v468_v60 = vadd.f32 %v1546_v58, %v467_v59  ;;  %v1126_v61 = vpop.f32.mrb[27].mxu1  ;;  %v530_v62 = vmax.f32 %v465_v56, 0.0  ;;  %v1258_v59 = vmov 1.0|1.0  }
 0x1f4   :  { %v1228_v61 = vld [vmem:[%s1661_s2 + $0xc8] sm:$0xff]  }
 0x1f5   :  { %v531_v63 = vmax.f32 %v468_v60, 0.0  ;;  %v1227_v60 = vld [vmem:[%s1661_s2 + $0xc0] sm:$0xff]  }
 0x1f7   :  { %v567_v0 = vpack.c.bf16 %v531_v63, %v530_v62 }
 0x1f8   :  { %v472_v2 = vpop.f32.mrb[28].mxu1 }
 0x1f9   :  { %v473_v3 = vadd.f32 %v1546_v58, %v472_v2  ;;  %v1129_v4 = vpop.f32.mrb[29].mxu1  ;;  %595 = vmatpush1.bf16.msra.mxu0 %v567_v0 }
 0x1fa   :  { %v475_v5 = vpop.f32.mrb[30].mxu1  ;;  %596 = vmatprep.subr.bf16.mxu0 %v1257_v41  ;;  %v1229_v4 = vld [vmem:[%s1661_s2 + $0xd0] sm:$0xff]  }
 0x1fb   :  { %v476_v6 = vadd.f32 %v1546_v58, %v475_v5  ;;  %v1130_v7 = vpop.f32.mrb[31].mxu1  ;;  %v532_v8 = vmax.f32 %v473_v3, 0.0  ;;  %v1230_v5 = vld [vmem:[%s1661_s2 + $0xd8] sm:$0xff]  }
 0x1fd   :  { %v533_v9 = vmax.f32 %v476_v6, 0.0  ;;  %v947_v6 = vld [vmem:[%s1662_s3 + $0x2] ss:$0 sm:$0xff] }
 0x1ff   :  { %v568_v10 = vpack.c.bf16 %v533_v9, %v532_v8 }
 0x200   :  { %v480_v11 = vpop.f32.mrb[32].mxu1 }
 0x201   :  { %v481_v12 = vadd.f32 %v1546_v58, %v480_v11  ;;  %v1133_v13 = vpop.f32.mrb[33].mxu1  ;;  %597 = vmatpush1.bf16.msra.mxu0 %v568_v10 }
 0x202   :  { %v483_v14 = vpop.f32.mrb[34].mxu1  ;;  %598 = vmatprep.subr.bf16.mxu0 %v1257_v41 }
 0x203   :  { %v484_v15 = vadd.f32 %v1546_v58, %v483_v14  ;;  %v1134_v16 = vpop.f32.mrb[35].mxu1  ;;  %v534_v17 = vmax.f32 %v481_v12, 0.0 }
 0x205   :  { %v535_v18 = vmax.f32 %v484_v15, 0.0  ;;  %v956_v15 = vld [vmem:[%s1662_s3 + $0x3] ss:$0 sm:$0xff] }
 0x207   :  { %v569_v19 = vpack.c.bf16 %v535_v18, %v534_v17 }
 0x208   :  { %v488_v20 = vpop.f32.mrb[36].mxu1 }
 0x209   :  { %v489_v21 = vadd.f32 %v1546_v58, %v488_v20  ;;  %v1137_v22 = vpop.f32.mrb[37].mxu1  ;;  %599 = vmatpush1.bf16.msra.mxu0 %v569_v19 }
 0x20a   :  { %v491_v23 = vpop.f32.mrb[38].mxu1  ;;  %600 = vmatprep.subr.bf16.mxu0 %v1257_v41 }
 0x20b   :  { %v492_v24 = vadd.f32 %v1546_v58, %v491_v23  ;;  %v1138_v25 = vpop.f32.mrb[39].mxu1  ;;  %v536_v26 = vmax.f32 %v489_v21, 0.0 }
 0x20d   :  { %v537_v27 = vmax.f32 %v492_v24, 0.0  ;;  %v661_v24 = vld [vmem:[%s1662_s3 + $0x4] sm:$0x1] }
 0x20e   :  { %v854_v25 = vpack.c.bf16 %v661_v24, %v661_v24 }
 0x20f   :  { %v570_v28 = vpack.c.bf16 %v537_v27, %v536_v26 }
 0x210   :  { %v496_v29 = vpop.f32.mrb[40].mxu1 }
 0x211   :  { %v497_v30 = vadd.f32 %v1546_v58, %v496_v29  ;;  %v1141_v31 = vpop.f32.mrb[41].mxu1  ;;  %601 = vmatpush1.bf16.msra.mxu0 %v570_v28 }
 0x212   :  { %v499_v32 = vpop.f32.mrb[42].mxu1  ;;  %602 = vmatprep.subr.bf16.mxu0 %v1257_v41 }
 0x213   :  { %v500_v33 = vadd.f32 %v1546_v58, %v499_v32  ;;  %v1142_v34 = vpop.f32.mrb[43].mxu1  ;;  %v538_v35 = vmax.f32 %v497_v30, 0.0 }
 0x215   :  { %v539_v36 = vmax.f32 %v500_v33, 0.0 }
 0x217   :  { %v571_v37 = vpack.c.bf16 %v539_v36, %v538_v35 }
 0x218   :  { %v504_v38 = vpop.f32.mrb[44].mxu1 }
 0x219   :  { %v505_v39 = vadd.f32 %v1546_v58, %v504_v38  ;;  %v1145_v40 = vpop.f32.mrb[45].mxu1  ;;  %603 = vmatpush1.bf16.msra.mxu0 %v571_v37 }
 0x21a   :  { %v507_v42 = vpop.f32.mrb[46].mxu1  ;;  %604 = vmatprep.subr.bf16.mxu0 %v1257_v41 }
 0x21b   :  { %v508_v43 = vadd.f32 %v1546_v58, %v507_v42  ;;  %v1146_v44 = vpop.f32.mrb[47].mxu1  ;;  %v540_v45 = vmax.f32 %v505_v39, 0.0 }
 0x21d   :  { %v541_v46 = vmax.f32 %v508_v43, 0.0 }
 0x21f   :  { %v572_v47 = vpack.c.bf16 %v541_v46, %v540_v45 }
 0x220   :  { %v512_v48 = vpop.f32.mrb[48].mxu1 }
 0x221   :  { %v513_v50 = vadd.f32 %v1546_v58, %v512_v48  ;;  %v1149_v52 = vpop.f32.mrb[49].mxu1  ;;  %605 = vmatpush1.bf16.msra.mxu0 %v572_v47  ;;  %v1224_v58 = vld [vmem:[%s1661_s2 + $0xa8] sm:$0xff]  }
 0x222   :  { %v515_v53 = vpop.f32.mrb[50].mxu1  ;;  %606 = vmatprep.subr.bf16.mxu0 %v1257_v41  ;;  %v1223_v41 = vld [vmem:[%s1661_s2 + $0xa0] sm:$0xff]  }
 0x223   :  { %v542_v54 = vmax.f32 %v513_v50, 0.0  ;;  %v1150_v55 = vpop.f32.mrb[51].mxu1 }
 0x225   :  { %v573_v56 = vpack.c.bf16 %v542_v54, %v542_v54 }
 0x227   :  { %v580_v57 = vsel %vm578_vm5, %v573_v56, 0 }
 0x228   :  { %607 = vmatpush1.bf16.msra.mxu0 %v580_v57 }
 0x229   :  { %1171 = vmatprep.subr.bf16.mxu0 %v1255_v1 }
 0x22b   :  { %946 = vmatmul.mubr.msk.bf16.vlgmr.msra.gmra.mrb[52].mxu0 %vm945_vm6, %v1258_v59 }
 0x22c   :  { %1187 = vmatprep.mubr.msk.bf16.mxu0 %vm1256_vm0, %v1255_v1  ;;  %1172 = vmatpush3.bf16.msra.mxu0 %v1223_v41 }
 0x22d   :  { %1173 = vmatprep.subr.bf16.mxu0 %v1255_v1 }
 0x230   :  { %1174 = vmatpush3.bf16.msra.mxu0 %v1224_v58 }
 0x231   :  { %1175 = vmatprep.subr.bf16.mxu0 %v1255_v1 }
 0x234   :  { %1176 = vmatpush3.bf16.msra.mxu0 %v1225_v51 }
 0x235   :  { %1177 = vmatprep.subr.bf16.mxu0 %v1255_v1 }
 0x238   :  { %1178 = vmatpush3.bf16.msra.mxu0 %v1226_v49 }
 0x239   :  { %1179 = vmatprep.subr.bf16.mxu0 %v1255_v1 }
 0x23c   :  { %1180 = vmatpush3.bf16.msra.mxu0 %v1227_v60 }
 0x23d   :  { %1181 = vmatprep.subr.bf16.mxu0 %v1255_v1 }
 0x240   :  { %1182 = vmatpush3.bf16.msra.mxu0 %v1228_v61 }
 0x241   :  { %1183 = vmatprep.subr.bf16.mxu0 %v1255_v1 }
 0x244   :  { %1184 = vmatpush3.bf16.msra.mxu0 %v1229_v4 }
 0x245   :  { %1185 = vmatprep.subr.bf16.mxu0 %v1255_v1 }
 0x248   :  { %1186 = vmatpush3.bf16.msra.mxu0 %v1230_v5 }
 0x2fe   :  { %v616_v62 = vpop.f32.mrb[52].mxu0 }
 0x2ff   :  { %v664_v63 = vpack.c.bf16 %v616_v62, %v616_v62  ;;  %v618_v0 = vpop.f32.mrb[53].mxu0 }
 0x300   :  { %v619_v2 = vpop.f32.mrb[54].mxu0 }
 0x301   :  { %1168 = vmatmul.mubr.bf16.vlgmr.msra.gmra.mrb[52].mxu1 %v664_v63  ;;  %v620_v3 = vpop.f32.mrb[55].mxu0 }
 0x302   :  { %1193 = vmatprep.mubr.msk.bf16.mxu1 %vm1256_vm0, %v1255_v1  ;;  %v662_v1 = vld [vmem:[%s1662_s3 + $0x5] sm:$0x1] }
 0x303   :  { %858 = vperm.xlu0 %1202, %v662_v1  }
 0x382   :  { %v859_v26 = vpop.permute.xlu0 %858 }
 0x3d4   :  { %v751_v7 = vpop.f32.mrb[52].mxu1 }
 0x3d5   :  { %v752_v8 = vadd.f32 %v947_v6, %v751_v7  ;;  %v1169_v9 = vpop.f32.mrb[53].mxu1 }
 0x3d6   :  { %v754_v10 = vpop.f32.mrb[54].mxu1 }
 0x3d7   :  { %v757_v11 = vmax.f32 %v752_v8, 0.0  ;;  %v1170_v12 = vpop.f32.mrb[55].mxu1 }
 0x3d9   :  { %v758_v13 = vadd.f32 %v757_v11, %v616_v62 }
 0x3db   :  { %v759_v14 = vpack.c.bf16 %v758_v13, %v758_v13 }
 0x3dd   :  { %1188 = vmatmul.mubr.bf16.vlgmr.msra.gmra.mrb[56].mxu0 %v759_v14 }
 0x4b0   :  { %v846_v16 = vpop.f32.mrb[56].mxu0 }
 0x4b1   :  { %v847_v17 = vadd.f32 %v956_v15, %v846_v16  ;;  %v1189_v18 = vpop.f32.mrb[57].mxu0 }
 0x4b2   :  { %v849_v19 = vpop.f32.mrb[58].mxu0 }
 0x4b3   :  { %v852_v20 = vmax.f32 %v847_v17, 0.0  ;;  %v1190_v21 = vpop.f32.mrb[59].mxu0 }
 0x4b5   :  { %v853_v22 = vadd.f32 %v852_v20, %v758_v13 }
 0x4b7   :  { %v855_v23 = vpack.c.bf16 %v853_v22, %v853_v22 }
 0x4b9   :  { %1192 = vmatpush3.bf16.xpose.msra.mxu1 %v855_v23 }
 0x4c0   :  { %1194 = vmatmul.mubr.bf16.vlgmr.msra.gmra.mrb[56].mxu1 %v854_v25 }
 0x593   :  { %v895_v27 = vpop.f32.mrb[56].mxu1 }
 0x594   :  { %v1195_v28 = vpop.f32.mrb[57].mxu1  ;;  %v896_v29 = vadd.f32 %v895_v27, %v859_v26 }
 0x595   :  { %v898_v30 = vpop.f32.mrb[58].mxu1 }
 0x596   :  { %v1196_v31 = vpop.f32.mrb[59].mxu1  ;;  %902 = vst.msk [vmem:[#allocation3] sm:$0x1] %vm901_vm7, %v896_v29 }
 0x597   :  { %1242 = shalt.err (!%p1239_p4)
}
 0x598   :  { %s1243_s5 = scalar_lea.hbm %s1663_s4, 16 }
 0x599   :  { %p1244_p5 = scmp.ne.s32.totalorder %s1663_s4, %s1243_s5  ;;  %p1247_p6 = scmp.lt.u32.totalorder %s1243_s5, %s1663_s4 }
 0x59b   :  { %p1249_p7 = pnand %p1247_p6, %p1244_p5 }
 0x59d   :  { %1252 = shalt.err (!%p1249_p7)
}
 0x59e   :  { %912 = dma.vmem_to_hbm [thread:$0]  %s910_s27, 16, %s1663_s4, [#allocation4]  }
 0x59f   :  { %1253 = dma.done.wait [#allocation4], 16  }
 0x5a0   :  { %1254 = vsyncadd [#allocation4], 4294967280 }
 0x5a1   :  { %916 = vsyncpa [#allocation4], 1 }

</bundles_post_ra>
